<compile_context>
chip_gen: v5e
topology: v5e:2x2
jax: 0.10.0
libtpu: 0.0.40
codegen_flags: <defaults>
</compile_context>

<pallas_src>
import jax
import jax.numpy as jnp
from jax import lax
from jax.experimental import pallas as pl
from jax.experimental.pallas import tpu as pltpu

LN_EPS = 1e-5


def _round_up(a, b):
    return (a + b - 1) // b * b


def noise_mlp_kernel(x_ref, w1_ref, b1_ref, w2_ref, b2_ref, g_ref, beta_ref,
                     o_ref, acc_ref):
    # One (row-tile i, F-chunk k) grid step.
    #   x_ref:  (tm, D)   w1_ref: (D, tf)   b1_ref: (1, tf)  [f32]
    #   w2_ref: (tf, D)   b2_ref/g_ref/beta_ref: (1, D)      [f32]
    #   o_ref:  (tm, D)   acc_ref: (tm, D) f32 scratch
    k = pl.program_id(1)

    @pl.when(k == 0)
    def _init():
        acc_ref[...] = jnp.zeros_like(acc_ref)

    x = x_ref[...]                                    # native dtype -> MXU

    # fc1 chunk + ReLU: (tm, tf), f32 accumulation on the MXU.
    h = jnp.dot(x, w1_ref[...], preferred_element_type=jnp.float32)
    h = jnp.maximum(h + b1_ref[...], 0.0)

    # fc2 chunk: accumulate partial (tm, D) product into the f32 scratch.
    # h goes back at the weight dtype so bf16 weights run at native MXU rate.
    acc_ref[...] += jnp.dot(h.astype(w2_ref.dtype), w2_ref[...],
                            preferred_element_type=jnp.float32)

    @pl.when(k == pl.num_programs(1) - 1)
    def _finalize():
        z = acc_ref[...] + b2_ref[...] + x.astype(jnp.float32)
        # Two-pass LayerNorm stats in f32 (no E[z^2]-E[z]^2 cancellation).
        mean = jnp.mean(z, axis=-1, keepdims=True)
        zc = z - mean
        var = jnp.mean(zc * zc, axis=-1, keepdims=True)
        out = zc * lax.rsqrt(var + LN_EPS) * g_ref[...] + beta_ref[...]
        o_ref[...] = out.astype(o_ref.dtype)


def noise_mlp_layer(x, w1, b1, w2, b2, gamma, beta, *,
                    tm=512, tf=2048, matmul_dtype=None, vmem_limit_bytes=None):
    """x: [B, S, D]; w1: [D, F]; b1: [F]; w2: [F, D]; b2: [D]; gamma/beta: [D]."""
    B, S, D = x.shape
    F_ = w1.shape[1]
    M = B * S
    f32 = jnp.float32

    x2 = x.reshape(M, D)
    w1c, w2c = w1, w2
    if matmul_dtype is not None:
        # One-time cast of MXU operands (recommended on v5e/v6e for f32 inputs).
        x2 = x2.astype(matmul_dtype)
        w1c = w1c.astype(matmul_dtype)
        w2c = w2c.astype(matmul_dtype)

    # ---- row (M) tiling ----------------------------------------------------
    itx = x2.dtype.itemsize
    sub = 8 if itx == 4 else (16 if itx == 2 else 32)   # f32 / bf16 / 8-bit
    tm_eff = _round_up(max(sub, min(tm, M)), sub)
    n_rows = pl.cdiv(M, tm_eff)
    if n_rows == 1 and tm_eff >= 2 * sub:
        # Split so the "parallel" row axis has >= 2 steps (both v7x TCs busy).
        tm_eff = _round_up(pl.cdiv(M, 2), sub)
    elif n_rows > 1 and n_rows % 2 == 1:
        # Keep the parallel row-tile count even for megacore sharding.
        tm_eff = _round_up(pl.cdiv(M, n_rows + 1), sub)
    n_rows = pl.cdiv(M, tm_eff)
    M_pad = n_rows * tm_eff
    if M_pad != M:
        # Padded rows flow through matmul+LN (var=0 -> rsqrt(eps)) and are
        # sliced off below; harmless for this padding size.
        x2 = jnp.pad(x2, ((0, M_pad - M), (0, 0)))

    # ---- F (forward_dim) tiling ---------------------------------------------
    lane = 128
    tf_eff = max(lane, min(_round_up(tf, lane), _round_up(F_, lane)))
    n_f = pl.cdiv(F_, tf_eff)
    F_pad = n_f * tf_eff

    # One-time param conversions in the wrapper (not per grid step).
    b1r = b1.astype(f32).reshape(1, F_)
    if F_pad != F_:
        # Zero-padded fc1 columns give ReLU(0)=0 and contribute nothing to fc2.
        w1c = jnp.pad(w1c, ((0, 0), (0, F_pad - F_)))
        w2c = jnp.pad(w2c, ((0, F_pad - F_), (0, 0)))
        b1r = jnp.pad(b1r, ((0, 0), (0, F_pad - F_)))
    b2r = b2.astype(f32).reshape(1, D)
    gr = gamma.astype(f32).reshape(1, D)
    br = beta.astype(f32).reshape(1, D)

    # ---- buffering & VMEM budget --------------------------------------------
    itw = w1c.dtype.itemsize
    ito = x.dtype.itemsize
    single = dict(pipeline_mode=pl.Buffered(1))    # grid-invariant operands
    w_kw = single if n_f == 1 else {}              # weight chunks: double-buffer
    w_bufs = 1 if n_f == 1 else 2                  # only when the F axis is tiled

    vmem_needed = (
        2 * tm_eff * D * itx              # x tile (double-buffered)
        + w_bufs * D * tf_eff * itw       # W1 chunk
        + w_bufs * tf_eff * 4             # b1 chunk (f32)
        + w_bufs * tf_eff * D * itw       # W2 chunk
        + 3 * D * 4                       # b2 / gamma / beta (single buffer)
        + 2 * tm_eff * D * ito            # output tile
        + tm_eff * D * 4                  # f32 accumulator scratch
        + tm_eff * tf_eff * 4             # f32 h intermediate headroom
    )
    if vmem_limit_bytes is None:
        cap = 64 * 1024 * 1024            # conservative default: v7x per-TC
        try:
            cap = int(pltpu.get_tpu_info().vmem_capacity_bytes)
        except Exception:
            pass
        vmem_limit_bytes = int(min(cap - (4 << 20),
                                   max(16 << 20, (vmem_needed * 3) // 2)))

    cost = pl.CostEstimate(
        flops=4 * M_pad * D * F_pad,      # two matmuls: 2*M*D*F each
        transcendentals=M_pad,            # one rsqrt per row
        bytes_accessed=(2 * M_pad * D * max(itx, ito)
                        + 2 * D * F_pad * itw + (F_pad + 3 * D) * 4))

    out = pl.pallas_call(
        noise_mlp_kernel,
        out_shape=jax.ShapeDtypeStruct((M_pad, D), x.dtype),
        grid_spec=pltpu.PrefetchScalarGridSpec(
            num_scalar_prefetch=0,
            grid=(n_rows, n_f),
            in_specs=[
                pl.BlockSpec((tm_eff, D), lambda i, k: (i, 0)),          # x rows
                pl.BlockSpec((D, tf_eff), lambda i, k: (0, k), **w_kw),  # W1 chunk
                pl.BlockSpec((1, tf_eff), lambda i, k: (0, k), **w_kw),  # b1 chunk
                pl.BlockSpec((tf_eff, D), lambda i, k: (k, 0), **w_kw),  # W2 chunk
                pl.BlockSpec((1, D), lambda i, k: (0, 0), **single),     # b2
                pl.BlockSpec((1, D), lambda i, k: (0, 0), **single),     # gamma
                pl.BlockSpec((1, D), lambda i, k: (0, 0), **single),     # beta
            ],
            out_specs=pl.BlockSpec((tm_eff, D), lambda i, k: (i, 0)),
            scratch_shapes=[pltpu.VMEM((tm_eff, D), jnp.float32)],
        ),
        compiler_params=pltpu.CompilerParams(
            dimension_semantics=("parallel", "arbitrary"),
            vmem_limit_bytes=vmem_limit_bytes),
        cost_estimate=cost,
    )(x2, w1c, b1r, w2c, b2r, gr, br)

    return out[:M].reshape(B, S, D)


def reference(x, w1, b1, w2, b2, gamma, beta):
    h = jnp.maximum(x @ w1 + b1, 0.0)
    y = h @ w2 + b2
    z = y + x
    mean = jnp.mean(z, axis=-1, keepdims=True)
    var = jnp.mean((z - mean) ** 2, axis=-1, keepdims=True)
    return (z - mean) / jnp.sqrt(var + LN_EPS) * gamma + beta


if __name__ == "__main__":
    # Small shapes consistent with the module: input_dim=128, forward_dim=256.
    B, S, D, Ff = 2, 8, 128, 256
    key = jax.random.PRNGKey(0)
    kx, k1, k2, k3, k4, k5, k6 = jax.random.split(key, 7)

    x = jax.random.normal(kx, (B, S, D), dtype=jnp.float32)

    # Deterministic parameter init (weights_init stand-in).
    w1 = jax.random.normal(k1, (D, Ff), dtype=jnp.float32) * 0.05
    b1 = jax.random.normal(k3, (Ff,), dtype=jnp.float32) * 0.05
    w2 = jax.random.normal(k2, (Ff, D), dtype=jnp.float32) * 0.05
    b2 = jax.random.normal(k4, (D,), dtype=jnp.float32) * 0.05
    gamma = 1.0 + 0.1 * jax.random.normal(k5, (D,), dtype=jnp.float32)
    beta = 0.1 * jax.random.normal(k6, (D,), dtype=jnp.float32)

    ref = reference(x, w1, b1, w2, b2, gamma, beta)

    # 1) Single-F-chunk path (weights fully resident, single-buffered).
    out = jax.block_until_ready(
        noise_mlp_layer(x, w1, b1, w2, b2, gamma, beta))
    assert out.shape == (B, S, D)
    err = float(jnp.max(jnp.abs(out - ref)))
    assert jnp.allclose(out, ref, atol=1e-4, rtol=1e-4), f"max err {err}"

    # 2) F-tiled accumulator path (tf=128 -> 2 chunks over forward_dim).
    out_tiled = jax.block_until_ready(
        noise_mlp_layer(x, w1, b1, w2, b2, gamma, beta, tf=128))
    err_t = float(jnp.max(jnp.abs(out_tiled - ref)))
    assert jnp.allclose(out_tiled, ref, atol=1e-4, rtol=1e-4), f"max err {err_t}"

    # 3) bf16 matmul-operand path (native v5e/v6e MXU rate) -- loose tolerance.
    out_bf16 = jax.block_until_ready(
        noise_mlp_layer(x, w1, b1, w2, b2, gamma, beta,
                        matmul_dtype=jnp.bfloat16))
    err_b = float(jnp.max(jnp.abs(out_bf16 - ref)))
    assert jnp.allclose(out_bf16, ref, atol=1e-1, rtol=1e-1), f"max err {err_b}"

    print("KERNEL_OK")
</pallas_src>

<mosaic_0001>
module attributes {stable_mosaic.version = 11 : i64} {
  func.func @noise_mlp_kernel(%arg0: i32, %arg1: i32, %arg2: memref<8x128xf32, #tpu.memory_space<vmem>>, %arg3: memref<128x256xf32, #tpu.memory_space<vmem>>, %arg4: memref<1x256xf32, #tpu.memory_space<vmem>>, %arg5: memref<256x128xf32, #tpu.memory_space<vmem>>, %arg6: memref<1x128xf32, #tpu.memory_space<vmem>>, %arg7: memref<1x128xf32, #tpu.memory_space<vmem>>, %arg8: memref<1x128xf32, #tpu.memory_space<vmem>>, %arg9: memref<8x128xf32, #tpu.memory_space<vmem>>, %arg10: memref<8x128xf32, #tpu.memory_space<vmem>>) attributes {dimension_semantics = [#tpu.dimension_semantics<parallel>, #tpu.dimension_semantics<arbitrary>], iteration_bounds = array<i64: 2, 1>, scalar_prefetch = 0 : i64, scratch_operands = 1 : i64, tpu.core_type = #tpu.core_type<tc>, window_params = [{transform_indices = @transform_0, window_bounds = array<i64: 8, 128>}, {pipeline_mode = #tpu.pipeline_mode<synchronous>, transform_indices = @transform_1, window_bounds = array<i64: 128, 256>}, {pipeline_mode = #tpu.pipeline_mode<synchronous>, transform_indices = @transform_2, window_bounds = array<i64: 1, 256>}, {pipeline_mode = #tpu.pipeline_mode<synchronous>, transform_indices = @transform_3, window_bounds = array<i64: 256, 128>}, {pipeline_mode = #tpu.pipeline_mode<synchronous>, transform_indices = @transform_4, window_bounds = array<i64: 1, 128>}, {pipeline_mode = #tpu.pipeline_mode<synchronous>, transform_indices = @transform_5, window_bounds = array<i64: 1, 128>}, {pipeline_mode = #tpu.pipeline_mode<synchronous>, transform_indices = @transform_6, window_bounds = array<i64: 1, 128>}, {transform_indices = @transform_7, window_bounds = array<i64: 8, 128>}]} {
    %c0_i32 = arith.constant 0 : i32
    %0 = arith.cmpi eq, %arg1, %c0_i32 : i32
    %1 = arith.extui %0 : i1 to i32
    %c0_i32_0 = arith.constant 0 : i32
    %2 = arith.cmpi ne, %1, %c0_i32_0 : i32
    scf.if %2 {
      %cst_16 = arith.constant 0.000000e+00 : f32
      %19 = vector.broadcast %cst_16 : f32 to vector<8x128xf32>
      %c0_17 = arith.constant 0 : index
      %c0_18 = arith.constant 0 : index
      %20 = vector.load %arg10[%c0_17, %c0_18] : memref<8x128xf32, #tpu.memory_space<vmem>>, vector<8x128xf32>
      tpu.vector_store %arg10[%c0_17, %c0_18], %19 {strides = array<i32>} : memref<8x128xf32, #tpu.memory_space<vmem>>, vector<8x128xf32>,
    } else {
    }
    %c0 = arith.constant 0 : index
    %c0_1 = arith.constant 0 : index
    %3 = vector.load %arg2[%c0, %c0_1] : memref<8x128xf32, #tpu.memory_space<vmem>>, vector<8x128xf32>
    %c0_2 = arith.constant 0 : index
    %c0_3 = arith.constant 0 : index
    %4 = vector.load %arg3[%c0_2, %c0_3] : memref<128x256xf32, #tpu.memory_space<vmem>>, vector<128x256xf32>
    %cst = arith.constant dense<0.000000e+00> : vector<8x256xf32>
    %5 = tpu.matmul %3, %4, %cst {dimension_numbers = #tpu.dot_dimension_numbers<[1], [0], [0], [1], [0, 0, 1, 1], [], []>} : vector<8x128xf32>, vector<128x256xf32>, vector<8x256xf32> -> vector<8x256xf32>
    %c0_4 = arith.constant 0 : index
    %c0_5 = arith.constant 0 : index
    %6 = vector.load %arg4[%c0_4, %c0_5] : memref<1x256xf32, #tpu.memory_space<vmem>>, vector<1x256xf32>
    %7 = vector.broadcast %6 : vector<1x256xf32> to vector<8x256xf32>
    %8 = arith.addf %5, %7 : vector<8x256xf32>
    %cst_6 = arith.constant 0.000000e+00 : f32
    %9 = vector.broadcast %cst_6 : f32 to vector<8x256xf32>
    %10 = arith.maximumf %8, %9 : vector<8x256xf32>
    %c0_7 = arith.constant 0 : index
    %c0_8 = arith.constant 0 : index
    %11 = vector.load %arg10[%c0_7, %c0_8] : memref<8x128xf32, #tpu.memory_space<vmem>>, vector<8x128xf32>
    %c0_9 = arith.constant 0 : index
    %c0_10 = arith.constant 0 : index
    %12 = vector.load %arg5[%c0_9, %c0_10] : memref<256x128xf32, #tpu.memory_space<vmem>>, vector<256x128xf32>
    %cst_11 = arith.constant dense<0.000000e+00> : vector<8x128xf32>
    %13 = tpu.matmul %10, %12, %cst_11 {dimension_numbers = #tpu.dot_dimension_numbers<[1], [0], [0], [1], [0, 0, 1, 1], [], []>} : vector<8x256xf32>, vector<256x128xf32>, vector<8x128xf32> -> vector<8x128xf32>
    %14 = arith.addf %11, %13 : vector<8x128xf32>
    %c0_12 = arith.constant 0 : index
    %c0_13 = arith.constant 0 : index
    %15 = vector.load %arg10[%c0_12, %c0_13] : memref<8x128xf32, #tpu.memory_space<vmem>>, vector<8x128xf32>
    tpu.vector_store %arg10[%c0_12, %c0_13], %14 {strides = array<i32>} : memref<8x128xf32, #tpu.memory_space<vmem>>, vector<8x128xf32>,
    %c0_i32_14 = arith.constant 0 : i32
    %16 = arith.cmpi eq, %arg1, %c0_i32_14 : i32
    %17 = arith.extui %16 : i1 to i32
    %c0_i32_15 = arith.constant 0 : i32
    %18 = arith.cmpi ne, %17, %c0_i32_15 : i32
    scf.if %18 {
      %c0_16 = arith.constant 0 : index
      %c0_17 = arith.constant 0 : index
      %19 = vector.load %arg10[%c0_16, %c0_17] : memref<8x128xf32, #tpu.memory_space<vmem>>, vector<8x128xf32>
      %c0_18 = arith.constant 0 : index
      %c0_19 = arith.constant 0 : index
      %20 = vector.load %arg6[%c0_18, %c0_19] : memref<1x128xf32, #tpu.memory_space<vmem>>, vector<1x128xf32>
      %21 = vector.broadcast %20 : vector<1x128xf32> to vector<8x128xf32>
      %22 = arith.addf %19, %21 : vector<8x128xf32>
      %23 = arith.addf %22, %3 : vector<8x128xf32>
      %cst_20 = arith.constant dense<0.000000e+00> : vector<8xf32>
      %24 = vector.multi_reduction <add>, %23, %cst_20 [1] : vector<8x128xf32> to vector<8xf32>
      %25 = vector.shape_cast %24 : vector<8xf32> to vector<8x1xf32>
      %cst_21 = arith.constant 1.280000e+02 : f32
      %26 = vector.broadcast %cst_21 : f32 to vector<8x1xf32>
      %27 = arith.divf %25, %26 : vector<8x1xf32>
      %28 = vector.broadcast %27 : vector<8x1xf32> to vector<8x128xf32>
      %29 = arith.subf %23, %28 : vector<8x128xf32>
      %30 = arith.mulf %29, %29 : vector<8x128xf32>
      %cst_22 = arith.constant dense<0.000000e+00> : vector<8xf32>
      %31 = vector.multi_reduction <add>, %30, %cst_22 [1] : vector<8x128xf32> to vector<8xf32>
      %32 = vector.shape_cast %31 : vector<8xf32> to vector<8x1xf32>
      %cst_23 = arith.constant 1.280000e+02 : f32
      %33 = vector.broadcast %cst_23 : f32 to vector<8x1xf32>
      %34 = arith.divf %32, %33 : vector<8x1xf32>
      %cst_24 = arith.constant 9.99999974E-6 : f32
      %35 = vector.broadcast %cst_24 : f32 to vector<8x1xf32>
      %36 = arith.addf %34, %35 : vector<8x1xf32>
      %37 = math.rsqrt %36 : vector<8x1xf32>
      %38 = vector.broadcast %37 : vector<8x1xf32> to vector<8x128xf32>
      %39 = arith.mulf %29, %38 : vector<8x128xf32>
      %c0_25 = arith.constant 0 : index
      %c0_26 = arith.constant 0 : index
      %40 = vector.load %arg7[%c0_25, %c0_26] : memref<1x128xf32, #tpu.memory_space<vmem>>, vector<1x128xf32>
      %41 = vector.broadcast %40 : vector<1x128xf32> to vector<8x128xf32>
      %42 = arith.mulf %39, %41 : vector<8x128xf32>
      %c0_27 = arith.constant 0 : index
      %c0_28 = arith.constant 0 : index
      %43 = vector.load %arg8[%c0_27, %c0_28] : memref<1x128xf32, #tpu.memory_space<vmem>>, vector<1x128xf32>
      %44 = vector.broadcast %43 : vector<1x128xf32> to vector<8x128xf32>
      %45 = arith.addf %42, %44 : vector<8x128xf32>
      %c0_29 = arith.constant 0 : index
      %c0_30 = arith.constant 0 : index
      %46 = vector.load %arg9[%c0_29, %c0_30] : memref<8x128xf32, #tpu.memory_space<vmem>>, vector<8x128xf32>
      tpu.vector_store %arg9[%c0_29, %c0_30], %45 {strides = array<i32>} : memref<8x128xf32, #tpu.memory_space<vmem>>, vector<8x128xf32>,
    } else {
    }
    return
  }
  func.func @transform_0(%arg0: i32, %arg1: i32) -> (i32, i32) {
    %c0_i32 = arith.constant 0 : i32
    %c0_i32_0 = arith.constant 0 : i32
    return %arg0, %c0_i32 : i32, i32
  }
  func.func @transform_1(%arg0: i32, %arg1: i32) -> (i32, i32) {
    %c0_i32 = arith.constant 0 : i32
    %c0_i32_0 = arith.constant 0 : i32
    return %c0_i32, %arg1 : i32, i32
  }
  func.func @transform_2(%arg0: i32, %arg1: i32) -> (i32, i32) {
    %c0_i32 = arith.constant 0 : i32
    %c0_i32_0 = arith.constant 0 : i32
    return %c0_i32, %arg1 : i32, i32
  }
  func.func @transform_3(%arg0: i32, %arg1: i32) -> (i32, i32) {
    %c0_i32 = arith.constant 0 : i32
    %c0_i32_0 = arith.constant 0 : i32
    return %arg1, %c0_i32 : i32, i32
  }
  func.func @transform_4(%arg0: i32, %arg1: i32) -> (i32, i32) {
    %c0_i32 = arith.constant 0 : i32
    %c0_i32_0 = arith.constant 0 : i32
    %c0_i32_1 = arith.constant 0 : i32
    return %c0_i32, %c0_i32_0 : i32, i32
  }
  func.func @transform_5(%arg0: i32, %arg1: i32) -> (i32, i32) {
    %c0_i32 = arith.constant 0 : i32
    %c0_i32_0 = arith.constant 0 : i32
    %c0_i32_1 = arith.constant 0 : i32
    return %c0_i32, %c0_i32_0 : i32, i32
  }
  func.func @transform_6(%arg0: i32, %arg1: i32) -> (i32, i32) {
    %c0_i32 = arith.constant 0 : i32
    %c0_i32_0 = arith.constant 0 : i32
    %c0_i32_1 = arith.constant 0 : i32
    return %c0_i32, %c0_i32_0 : i32, i32
  }
  func.func @transform_7(%arg0: i32, %arg1: i32) -> (i32, i32) {
    %c0_i32 = arith.constant 0 : i32
    %c0_i32_0 = arith.constant 0 : i32
    return %arg0, %c0_i32 : i32, i32
  }
}

</mosaic_0001>

<bundles_post_ra>
// kernel: tpu_custom_call.1
= control target key start
LH: loop header
LB: loop body
LE: loop exit
PB: predicated region body
PF: predicated region fallthrough
CT: control target
= control target key end

     0   :  { %s1287_s0 = inlined_call_operand.hbm [shape: f32[16,128], index: 0, kind: input, shape index: {}]   ;;  %s1288_s1 = inlined_call_operand.hbm [shape: f32[128,256], index: 1, kind: input, shape index: {}]   ;;  %s1289_s2 = inlined_call_operand.hbm [shape: f32[1,256], index: 2, kind: input, shape index: {}]   ;;  %s1290_s3 = inlined_call_operand.hbm [shape: f32[256,128], index: 3, kind: input, shape index: {}]   ;;  %s1291_s4 = inlined_call_operand.vmem [shape: f32[1,128], index: 4, kind: input, shape index: {}]   ;;  %s1292_s5 = inlined_call_operand.vmem [shape: f32[1,128], index: 5, kind: input, shape index: {}]   ;;  %s1293_s6 = inlined_call_operand.vmem [shape: f32[1,128], index: 6, kind: input, shape index: {}]   ;;  %s1294_s7 = inlined_call_operand.hbm [shape: f32[16,128], index: 7, kind: output, shape index: {}]  }
   0x1   :  { %1295 = sst [smem:[#allocation16_spill]] %s1288_s1 }
   0x2   :  { %1296 = sst [smem:[#allocation17_spill]] %s1289_s2 }
   0x3   :  { %12 = vsyncpa [#allocation4], 0 }
   0x4   :  { %14 = vsyncpa [#allocation4 + $0x1], 0 }
   0x5   :  { %15 = vsyncpa [#allocation7], 0 }
   0x6   :  { %16 = vsyncpa [#allocation10], 0 }
   0x7   :  { %17 = vsyncpa [#allocation5], 0 }
   0x8   :  { %19 = vsyncpa [#allocation5 + $0x1], 0  ;;  %s1104_s24 = smov 0   ;;  %s1106_s25 = smov 0  }
   0x9   :  { %s1108_s26 = smov 0   ;;  %s1110_s27 = smov 0  }
   0xa   :  { %s1112_s28 = smov 0   ;;  %s1114_s29 = smov 0  }
   0xb LB: > { %s720_s30 = sadd.s32 4294967295, %s1054_s29   ;;  %p722_p0 = scmp.ge.s32.totalorder %s1054_s29, 1  ;;  %s1054_s29 = sphi %s1114_s29, %s25_s29   ;;  %s1050_s28 = sphi %s1112_s28, %s1310_s28   ;;  %s1046_s27 = sphi %s1110_s27, %s1309_s27   ;;  %s1042_s26 = sphi %s1108_s26, %s1308_s26   ;;  %s1038_s25 = sphi %s1106_s25, %s1307_s25   ;;  %s1034_s24 = sphi %s1104_s24, %s1306_s24  }
   0xc   : > { %p1138_p1 = scmp.eq.s32.totalorder %s720_s30, 0  ;;  %p235_p2 = scmp.lt.s32.totalorder %s1054_s29, 3 }
   0xd   : > { %s1298_s1 = sld [smem:[#allocation16_spill]]  ;;  %s1056_s13 = smov [#allocation6]  }
   0xe   : > { %p1146_p3 = pnand %p722_p0, %p235_p2  ;;  %s251_s14 = sshll.u32 %s1056_s13, 4  ;;  %s252_s14 = int_to_ptr.vmem [resolvable:$true] %s251_s14 }
   0xf   : > { %p726_p6 = scmp.ge.s32.totalorder %s1054_s29, 2  ;;  %s1301_s2 = sld [smem:[#allocation17_spill]] }
  0x10   : > { %p755_p4 = pneg %p1146_p3  ;;  %s1057_s19 = smov 256  }
  0x11   : > { %s1058_s20 = smov 16   ;;  %s1059_s21 = smov [#allocation8]  }
  0x12   : > { %p1154_p5 = pnand %p755_p4, %p1138_p1  ;;  %s268_s22 = sshll.u32 %s1059_s21, 4  ;;  %s269_s22 = int_to_ptr.vmem [resolvable:$true] %s268_s22 }
  0x13   : > { %s249_s11 = sshll.u32 %s1298_s1, 4  ;;  %s280_s10 = sshll.u32 %s1290_s3, 4  ;;  %s250_s11 = int_to_ptr.hbm [resolvable:$true] %s249_s11  ;;  %s281_s10 = int_to_ptr.hbm [resolvable:$true] %s280_s10 }
  0x14   : > { %758 = dma.hbm_to_vmem [thread:$0]  (!%p1154_p5), %s250_s11, 4096, %s252_s14, [#allocation7], %s1057_s19, %s1057_s19, %s1058_s20  }
  0x15   : > { %s266_s18 = sshll.u32 %s1301_s2, 4  ;;  %s1060_s13 = smov [#allocation9]   ;;  %s267_s18 = int_to_ptr.hbm [resolvable:$true] %s266_s18 }
  0x16   : > { %761 = dma.hbm_to_vmem [thread:$0]  (!%p1154_p5), %s267_s18, 32, %s269_s22, [#allocation7]  }
  0x17   : > { %s282_s16 = sshll.u32 %s1060_s13, 4  ;;  %s1061_s11 = smov 128   ;;  %s283_s16 = int_to_ptr.vmem [resolvable:$true] %s282_s16 }
  0x18   : > { %s1062_s14 = smov 8   ;;  %s721_s17 = sadd.s32 4294967294, %s1054_s29  }
  0x19   : > { %764 = dma.hbm_to_vmem [thread:$0]  (!%p1154_p5), %s281_s10, 4096, %s283_s16, [#allocation10], %s1061_s11, %s1061_s11, %s1062_s14  }
  0x1a   : > { %s37_s19 = sadd.s32 1, %s1050_s28  ;;  %s44_s20 = sadd.s32 1, %s1042_s26 }
  0x1b   : > { %p39_p7 = scmp.ge.s32.totalorder %s37_s19, 2  ;;  %p51_p8 = scmp.ne.s32.totalorder %s1042_s26, %s1038_s25 }
  0x1c   : > { %p52_p9 = scmp.eq.s32.totalorder %s1054_s29, 0  ;;  %p57_p10 = scmp.ne.s32.totalorder %s1038_s25, %s1034_s24 }
  0x1d   : > { %s1312_s19 = smov (%p39_p7, %s37_s19), 0  ;;  %p222_p13 = scmp.eq.s32.totalorder %s720_s30, 1 }
  0x1e   : > { %p1181_p11 = por %p52_p9, %p51_p8  ;;  %p1187_p12 = por %p1138_p1, %p57_p10 }
  0x1f   : > { %s41_s21 = ssub.s32 %s1050_s28, %s1312_s19  ;;  %p228_p2 = scmp.eq.s32.totalorder %s721_s17, 1 }
  0x20   : > { %p42_p0 = scmp.eq.s32.totalorder %s41_s21, 0  ;;  %p1195_p4 = por %p222_p13, %p51_p8 }
  0x21   : > { %p776_p5 = scmp.lt.s32.totalorder %s1054_s29, 2  ;;  %p1203_p7 = por %p228_p2, %p57_p10 }
  0x22   : > { %s1201_s23 = scalar_select %p42_p0, %s1042_s26, %s44_s20  }
  0x23   : > { %s305_s10 = sand.u32 1, %s1042_s26   ;;  %s728_s16 = sshll.u32 %s1050_s28, 3 }
  0x24   : > { %s727_s13 = sshll.u32 %s305_s10, 3  ;;  %s313_s30 = scalar_lea.hbm %s1287_s0, %s728_s16 }
  0x25   : > { %s309_s21 = scalar_lea.vmem [#allocation3], %s727_s13  ;;  %s315_s1 = sshll.u32 %s313_s30, 4  ;;  %s316_s1 = int_to_ptr.hbm [resolvable:$true] %s315_s1 }
  0x26   : > { %s317_s17 = sshll.u32 %s309_s21, 4  ;;  %p766_p8 = pnand %p776_p5, %p1181_p11  ;;  %s318_s17 = int_to_ptr.vmem [resolvable:$true] %s317_s17 }
  0x27   : > { %s306_s20 = scalar_lea.sflag [#allocation4], %s305_s10  ;;  %326 = sbr.rel (%p1146_p3) target bundleno = 618 (0x26a), region = 48 }
  0x28   : > { %768 = dma.hbm_to_vmem [thread:$0]  (!%p766_p8), %s316_s1, 128, %s318_s17, %s306_s20  }
  0x29   : > { %s1217_s2 = sand.u32 (!%p1146_p3), 1, %s1038_s25  }
  0x2a   : > { %s730_s16 = sshll.u32 (!%p1146_p3), %s1217_s2, 3  ;;  %s329_s13 = scalar_lea.sflag (!%p1146_p3), [#allocation4], %s1217_s2 }
  0x2b   : > { %s1223_s11 = scalar_lea.vmem (!%p1146_p3), [#allocation3], %s730_s16 }
  0x2c   : > { %1017 = dma.done.wait (%p1187_p12), %s329_s13, 128  }
  0x2d   : > { %1019 = vsyncadd (%p1187_p12), %s329_s13, 4294967168 }
  0x2e   : > { %1021 = dma.done.wait (%p1138_p1), [#allocation7], 4128  }
  0x2f   : > { %1023 = vsyncadd (%p1138_p1), [#allocation7], 4294963168 }
  0x30   : > { %1025 = dma.done.wait (%p1138_p1), [#allocation10], 4096  }
  0x31   : > { %1027 = vsyncadd (%p1138_p1), [#allocation10], 4294963200  ;;  %v418_v0 = vld [vmem:[#allocation6 + $0xf0] sm:$0xff]  ;;  %v419_v1 = vld [vmem:[#allocation6 + $0xf8] sm:$0xff]  ;;  %s736_s12 = sshll.u32 %s1046_s27, 3  ;;  %s378_s27 = scalar_lea.vmem [#allocation11], %s730_s16 }
  0x32   : > { %v416_v2 = vld [vmem:[#allocation6 + $0xe0] sm:$0xff]  ;;  %426 = vmatpush.msra.mxu0 %v418_v0  ;;  %446 = vmatpush.msra.mxu1 %v419_v1  ;;  %v417_v3 = vld [vmem:[#allocation6 + $0xe8] sm:$0xff]  ;;  %v414_v4 = vld [vmem:[#allocation6 + $0xd0] sm:$0xff]  ;;  %s602_s30 = scalar_lea.hbm %s1294_s7, %s736_s12  ;;  %s604_s20 = sshll.u32 %s378_s27, 4  ;;  %s605_s20 = int_to_ptr.vmem [resolvable:$true] %s604_s20 }
  0x33   : > { %v415_v5 = vld [vmem:[#allocation6 + $0xd8] sm:$0xff]  ;;  %v412_v6 = vld [vmem:[#allocation6 + $0xc0] sm:$0xff]  ;;  %v413_v7 = vld [vmem:[#allocation6 + $0xc8] sm:$0xff]  ;;  %s606_s13 = sshll.u32 %s602_s30, 4  ;;  %s984_s15 = scalar_lea.hbm %s1294_s7, 16  ;;  %s607_s13 = int_to_ptr.hbm [resolvable:$true] %s606_s13 }
  0x34   : > { %427 = vmatpush.msra.mxu0 %v416_v2  ;;  %447 = vmatpush.msra.mxu1 %v417_v3  ;;  %v410_v8 = vld [vmem:[#allocation6 + $0xb0] sm:$0xff]  ;;  %v411_v9 = vld [vmem:[#allocation6 + $0xb8] sm:$0xff]  ;;  %v408_v10 = vld [vmem:[#allocation6 + $0xa0] sm:$0xff]  ;;  %s978_s1 = sshra.s32 %s607_s13, 4  ;;  %s979_s1 = int_to_ptr.hbm [resolvable:$true] %s978_s1 }
  0x35   : > { %v409_v11 = vld [vmem:[#allocation6 + $0xa8] sm:$0xff]  ;;  %v406_v12 = vld [vmem:[#allocation6 + $0x90] sm:$0xff]  ;;  %v407_v13 = vld [vmem:[#allocation6 + $0x98] sm:$0xff]  ;;  %s980_s8 = scalar_lea.hbm %s979_s1, 8  ;;  %p985_p10 = scmp.lt.s32.totalorder %s979_s1, %s1294_s7 }
  0x36   : > { %428 = vmatpush.msra.mxu0 %v414_v4  ;;  %448 = vmatpush.msra.mxu1 %v415_v5  ;;  %v484_v14 = vld [vmem:[#allocation9 + $0x78] sm:$0xff]  ;;  %v483_v16 = vld [vmem:[#allocation9 + $0x70] sm:$0xff]  ;;  %v405_v18 = vld [vmem:[#allocation6 + $0x88] sm:$0xff]  ;;  %p981_p1 = scmp.ne.s32.totalorder %s979_s1, %s980_s8  ;;  %p986_p11 = scmp.lt.s32.totalorder %s984_s15, %s980_s8 }
  0x37   : > { %v500_v15 = vld [vmem:[#allocation9 + $0xf8] sm:$0xff]  ;;  %501 = vmatpush.msra.mxu2 %v484_v14  ;;  %v499_v19 = vld [vmem:[#allocation9 + $0xf0] sm:$0xff]  ;;  %v482_v20 = vld [vmem:[#allocation9 + $0x68] sm:$0xff] }
  0x38   : > { %429 = vmatpush.msra.mxu0 %v412_v6  ;;  %449 = vmatpush.msra.mxu1 %v413_v7  ;;  %v404_v17 = vld [vmem:[#allocation6 + $0x80] sm:$0xff]  ;;  %v498_v21 = vld [vmem:[#allocation9 + $0xe8] sm:$0xff]  ;;  %v403_v23 = vld [vmem:[#allocation6 + $0x78] sm:$0xff]  ;;  %p982_p3 = pnand %p981_p1, %p1195_p4  ;;  %p987_p12 = por %p986_p11, %p985_p10 }
  0x39   : > { %521 = vmatpush.msra.mxu3 %v500_v15  ;;  %v402_v22 = vld [vmem:[#allocation6 + $0x70] sm:$0xff]  ;;  %502 = vmatpush.msra.mxu2 %v483_v16  ;;  %v481_v24 = vld [vmem:[#allocation9 + $0x60] sm:$0xff]  ;;  %v480_v28 = vld [vmem:[#allocation9 + $0x58] sm:$0xff]  ;;  %v1063_v16 = vmov 128.0  }
  0x3a   : > { %430 = vmatpush.msra.mxu0 %v410_v8  ;;  %450 = vmatpush.msra.mxu1 %v411_v9  ;;  %v497_v25 = vld [vmem:[#allocation9 + $0xe0] sm:$0xff]  ;;  %v496_v29 = vld [vmem:[#allocation9 + $0xd8] sm:$0xff]  ;;  %v398_v30 = vld [vmem:[#allocation6 + $0x50] sm:$0xff]  ;;  %840 = vrcp.f32 %v1063_v16  ;;  %p983_p9 = pneg %p982_p3 }
  0x3b   : > { %522 = vmatpush.msra.mxu3 %v499_v19  ;;  %v400_v26 = vld [vmem:[#allocation6 + $0x60] sm:$0xff]  ;;  %v401_v27 = vld [vmem:[#allocation6 + $0x68] sm:$0xff]  ;;  %503 = vmatpush.msra.mxu2 %v482_v20  ;;  %v399_v31 = vld [vmem:[#allocation6 + $0x58] sm:$0xff] }
  0x3c   : > { %431 = vmatpush.msra.mxu0 %v408_v10  ;;  %451 = vmatpush.msra.mxu1 %v409_v11  ;;  %v396_v32 = vld [vmem:[#allocation6 + $0x40] sm:$0xff]  ;;  %v479_v33 = vld [vmem:[#allocation9 + $0x50] sm:$0xff]  ;;  %v397_v35 = vld [vmem:[#allocation6 + $0x48] sm:$0xff]  ;;  %p988_p13 = pnand %p987_p12, %p983_p9 }
  0x3d   : > { %523 = vmatpush.msra.mxu3 %v498_v21  ;;  %504 = vmatpush.msra.mxu2 %v481_v24  ;;  %v495_v34 = vld [vmem:[#allocation9 + $0xd0] sm:$0xff]  ;;  %v478_v36 = vld [vmem:[#allocation9 + $0x48] sm:$0xff]  ;;  %v477_v40 = vld [vmem:[#allocation9 + $0x40] sm:$0xff] }
  0x3e   : > { %432 = vmatpush.msra.mxu0 %v406_v12  ;;  %452 = vmatpush.msra.mxu1 %v407_v13  ;;  %v494_v37 = vld [vmem:[#allocation9 + $0xc8] sm:$0xff]  ;;  %v395_v39 = vld [vmem:[#allocation6 + $0x38] sm:$0xff]  ;;  %v493_v41 = vld [vmem:[#allocation9 + $0xc0] sm:$0xff] }
  0x3f   : > { %524 = vmatpush.msra.mxu3 %v497_v25  ;;  %505 = vmatpush.msra.mxu2 %v480_v28  ;;  %v394_v38 = vld [vmem:[#allocation6 + $0x30] sm:$0xff]  ;;  %v392_v42 = vld [vmem:[#allocation6 + $0x20] sm:$0xff]  ;;  %v393_v43 = vld [vmem:[#allocation6 + $0x28] sm:$0xff] }
  0x40   : > { %433 = vmatpush.msra.mxu0 %v404_v17  ;;  %453 = vmatpush.msra.mxu1 %v405_v18  ;;  %v476_v44 = vld [vmem:[#allocation9 + $0x38] sm:$0xff]  ;;  %v390_v46 = vld [vmem:[#allocation6 + $0x10] sm:$0xff]  ;;  %v389_v51 = vld [vmem:[#allocation6 + $0x8] sm:$0xff]  ;;  %v841_v17 = vpop.eup %840 }
  0x41   : > { %525 = vmatpush.msra.mxu3 %v496_v29  ;;  %506 = vmatpush.msra.mxu2 %v479_v33  ;;  %v492_v45 = vld [vmem:[#allocation9 + $0xb8] sm:$0xff]  ;;  %v475_v48 = vld [vmem:[#allocation9 + $0x30] sm:$0xff]  ;;  %v474_v53 = vld [vmem:[#allocation9 + $0x28] sm:$0xff]  ;;  %v556_v18 = vmul.f32 128.0, %v841_v17  ;;  %vm560_vm0 = vweird.f32 %v841_v17 }
  0x42   : > { %434 = vmatpush.msra.mxu0 %v402_v22  ;;  %454 = vmatpush.msra.mxu1 %v403_v23  ;;  %v391_v47 = vld [vmem:[#allocation6 + $0x18] sm:$0xff]  ;;  %v388_v50 = vld [vmem:[#allocation6] sm:$0xff]  ;;  %v490_v54 = vld [vmem:[#allocation9 + $0xa8] sm:$0xff] }
  0x43   : > { %526 = vmatpush.msra.mxu3 %v495_v34  ;;  %507 = vmatpush.msra.mxu2 %v478_v36  ;;  %v491_v49 = vld [vmem:[#allocation9 + $0xb0] sm:$0xff]  ;;  %v473_v55 = vld [vmem:[#allocation9 + $0x20] sm:$0xff]  ;;  %v472_v57 = vld [vmem:[#allocation9 + $0x18] sm:$0xff]  ;;  %v557_v19 = vsub.f32 1.0, %v556_v18 }
  0x44   : > { %435 = vmatpush.msra.mxu0 %v400_v26  ;;  %455 = vmatpush.msra.mxu1 %v401_v27  ;;  %v387_v52 = vld [vmem:[%s1223_s11] sm:$0xff]  ;;  %v489_v56 = vld [vmem:[#allocation9 + $0xa0] sm:$0xff]  ;;  %v420_v1 = vld [vmem:[#allocation8] sm:$0x3]  ;;  %s592_s11 = scalar_lea.sflag [#allocation5], %s1217_s2 }
  0x45   : > { %527 = vmatpush.msra.mxu3 %v494_v37  ;;  %508 = vmatpush.msra.mxu2 %v477_v40  ;;  %v488_v58 = vld [vmem:[#allocation9 + $0x98] sm:$0xff]  ;;  %v471_v59 = vld [vmem:[#allocation9 + $0x10] sm:$0xff]  ;;  %v470_v61 = vld [vmem:[#allocation9 + $0x8] sm:$0xff]  ;;  %v422_v2 = vperm.slane %v420_v1, 0  ;;  %v423_v3 = vperm.slane %v420_v1, 1  ;;  %v558_v20 = vmul.f32 %v841_v17, %v557_v19 }
  0x46   : > { %436 = vmatpush.msra.mxu0 %v398_v30  ;;  %456 = vmatpush.msra.mxu1 %v399_v31  ;;  %v487_v60 = vld [vmem:[#allocation9 + $0x90] sm:$0xff]  ;;  %v486_v62 = vld [vmem:[#allocation9 + $0x88] sm:$0xff]  ;;  %v469_v63 = vld [vmem:[#allocation9] sm:$0xff] }
  0x47   : > { %528 = vmatpush.msra.mxu3 %v493_v41  ;;  %509 = vmatpush.msra.mxu2 %v476_v44  ;;  %v485_v0 = vld [vmem:[#allocation9 + $0x80] sm:$0xff]  ;;  %v837_v10 = vld [vmem:[%s1291_s4] ss:$0 sm:$0xff]  ;;  %v559_v21 = vadd.f32 %v841_v17, %v558_v20 }
  0x48   : > { %437 = vmatpush.msra.mxu0 %v396_v32  ;;  %457 = vmatpush.msra.mxu1 %v397_v35  ;;  %v838_v36 = vld [vmem:[%s1292_s5] ss:$0 sm:$0xff] }
  0x49   : > { %529 = vmatpush.msra.mxu3 %v492_v45  ;;  %510 = vmatpush.msra.mxu2 %v475_v48  ;;  %v561_v22 = vsel %vm560_vm0, %v841_v17, %v559_v21 }
  0x4a   : > { %438 = vmatpush.msra.mxu0 %v394_v38  ;;  %458 = vmatpush.msra.mxu1 %v395_v39  ;;  %v839_v39 = vld [vmem:[%s1293_s6] ss:$0 sm:$0xff] }
  0x4b   : > { %530 = vmatpush.msra.mxu3 %v491_v49  ;;  %511 = vmatpush.msra.mxu2 %v474_v53 }
  0x4c   : > { %439 = vmatpush.msra.mxu0 %v392_v42  ;;  %459 = vmatpush.msra.mxu1 %v393_v43 }
  0x4d   : > { %531 = vmatpush.msra.mxu3 %v490_v54  ;;  %512 = vmatpush.msra.mxu2 %v473_v55 }
  0x4e   : > { %440 = vmatpush.msra.mxu0 %v390_v46  ;;  %460 = vmatpush.msra.mxu1 %v391_v47 }
  0x4f   : > { %532 = vmatpush.msra.mxu3 %v489_v56  ;;  %513 = vmatpush.msra.mxu2 %v472_v57 }
  0x50   : > { %441 = vmatpush.msra.mxu0 %v388_v50  ;;  %461 = vmatpush.msra.mxu1 %v389_v51 }
  0x51   : > { %442 = vmatmul.f32.vlgmr.msra.gmra.mxu0 %v387_v52  ;;  %462 = vmatmul.f32.vlgmr.msra.gmra.mxu1 %v387_v52 }
  0x52   : > { %533 = vmatpush.msra.mxu3 %v488_v58  ;;  %514 = vmatpush.msra.mxu2 %v471_v59 }
  0x54   : > { %534 = vmatpush.msra.mxu3 %v487_v60  ;;  %515 = vmatpush.msra.mxu2 %v470_v61 }
  0x56   : > { %535 = vmatpush.msra.mxu3 %v486_v62  ;;  %516 = vmatpush.msra.mxu2 %v469_v63 }
  0x58   : > { %536 = vmatpush.msra.mxu3 %v485_v0 }
  0xce   : > { %v443_v4 = vpop.f32.mrf.mxu0  ;;  %v463_v5 = vpop.f32.mrf.mxu1 }
  0xcf   : > { %v444_v6 = vadd.f32 %v443_v4, %v422_v2  ;;  %v464_v7 = vadd.f32 %v463_v5, %v423_v3 }
  0xd1   : > { %v466_v8 = vmax.f32 %v444_v6, 0.0  ;;  %v467_v9 = vmax.f32 %v464_v7, 0.0 }
  0xd3   : > { %517 = vmatmul.f32.vlgmr.msra.gmra.mxu2 %v466_v8  ;;  %537 = vmatmul.f32.vlgmr.msra.gmra.mxu3 %v467_v9 }
 0x156   : > { %v518_v11 = vpop.f32.mrf.mxu2  ;;  %v538_v12 = vpop.f32.mrf.mxu3 }
 0x157   : > { %v539_v13 = vadd.f32 %v538_v12, %v518_v11 }
 0x159   : > { %v551_v14 = vadd.f32 %v837_v10, %v539_v13 }
 0x15b   : > { %v552_v15 = vadd.f32 %v551_v14, %v387_v52 }
 0x15d   : > { %553 = vadd.xlane.f32.xlu0 %v552_v15 }
 0x1d0   : > { %v554_v23 = vpop.xlane.xlu0 %553 }
 0x1d1   : > { %v562_v24 = vmul.f32 %v561_v22, %v554_v23 }
 0x1d3   : > { %v563_v25 = vsub.f32 %v552_v15, %v562_v24 }
 0x1d5   : > { %v564_v26 = vmul.f32 %v563_v25, %v563_v25 }
 0x1d7   : > { %565 = vadd.xlane.f32.xlu0 %v564_v26 }
 0x24a   : > { %v566_v27 = vpop.xlane.xlu0 %565 }
 0x24b   : > { %v567_v28 = vmul.f32 %v566_v27, %v561_v22 }
 0x24d   : > { %v568_v29 = vadd.f32 1e-05, %v567_v28 }
 0x24f   : > { %842 = vrsqrt.f32 %v568_v29  ;;  %vm575_vm2 = vweird.f32 %v568_v29 }
 0x255   : > { %v843_v30 = vpop.eup %842 }
 0x256   : > { %v570_v31 = vmul.f32 %v843_v30, %v568_v29  ;;  %vm576_vm1 = vweird.f32 %v843_v30 }
 0x257   : > { %vm577_vm3 = vmor %vm575_vm2, %vm576_vm1 }
 0x258   : > { %v571_v32 = vmul.f32 %v843_v30, %v570_v31 }
 0x25a   : > { %v572_v33 = vmul.f32 0.5, %v571_v32 }
 0x25c   : > { %v573_v34 = vsub.f32 1.5, %v572_v33 }
 0x25e   : > { %v574_v35 = vmul.f32 %v843_v30, %v573_v34 }
 0x260   : > { %v578_v37 = vsel %vm577_vm3, %v843_v30, %v574_v35 }
 0x261   : > { %v579_v38 = vmul.f32 %v578_v37, %v563_v25 }
 0x263   : > { %v584_v40 = vmul.f32 %v838_v36, %v579_v38 }
 0x265   : > { %v589_v41 = vadd.f32 %v839_v39, %v584_v40 }
 0x267   : > { %590 = vst [vmem:[%s378_s27] sm:$0xff] %v589_v41 }
 0x268   : > { %991 = shalt.err (!%p988_p13)
}
 0x269   : > { %753 = dma.vmem_to_hbm [thread:$0]  (%p1195_p4), %s605_s20, 128, %s607_s13, %s592_s11  }
 0x26a PF: > { %s618_s2 = sand.u32 1, %s1034_s24   ;;  %p770_p0 = pnand %p726_p6, %p1203_p7 }
 0x26b   : > { %s619_s14 = scalar_lea.sflag [#allocation5], %s618_s2 }
 0x26c   : > { %p771_p2 = pneg %p770_p0 }
 0x26e   : > { %1029 = dma.done.wait (%p771_p2), %s619_s14, 128  }
 0x26f   : > { %1031 = vsyncadd (%p771_p2), %s619_s14, 4294967168  ;;  %s25_s29 = sadd.s32 1, %s1054_s29   ;;  %s1306_s24 = smov %s1038_s25 }
 0x270   : > { %p22_p5 = scmp.ge.s32.totalorder %s25_s29, 4   ;;  %s1307_s25 = smov %s1042_s26 }
 0x271   : > { %s1308_s26 = smov %s1201_s23  ;;  %s1309_s27 = smov %s1050_s28 }
 0x272   : > { %s1310_s28 = smov %s1312_s19  ;;  %24 = sbr.rel (!%p22_p5) target bundleno = 11 (0xb), region = 116 }
 0x277   :  { %625 = vsyncpa [#allocation4], 1 }
 0x278   :  { %627 = vsyncpa [#allocation4 + $0x1], 1 }
 0x279   :  { %628 = vsyncpa [#allocation7], 1 }
 0x27a   :  { %629 = vsyncpa [#allocation10], 1 }
 0x27b   :  { %630 = vsyncpa [#allocation5], 1 }
 0x27c   :  { %632 = vsyncpa [#allocation5 + $0x1], 1 }

</bundles_post_ra>
